<compile_context>
chip_gen: v6e
topology: v6e:2x2x1
jax: 0.10.0
libtpu: 0.0.40
codegen_flags: <defaults>
</compile_context>

<pallas_src>
import functools

import jax
import jax.numpy as jnp
from jax.experimental import pallas as pl
from jax.experimental.pallas import tpu as pltpu


def _round_up(x, m):
    return ((x + m - 1) // m) * m


def comparenet_kernel(x1_ref, x2_ref,
                      w1_ref, b1_ref,
                      w2a_ref, w2b_ref, w2c_ref, b2_ref,
                      w3_ref, b3_ref,
                      out_ref, *, compute_dtype):
    f32 = jnp.float32

    # ---- fc1 (shared weights) on both inputs ------------------------------
    h1 = jnp.dot(x1_ref[...].astype(compute_dtype), w1_ref[...],
                 preferred_element_type=f32)
    h2 = jnp.dot(x2_ref[...].astype(compute_dtype), w1_ref[...],
                 preferred_element_type=f32)
    h1 = jnp.maximum(h1 + b1_ref[...], 0.0)        # f32 VPU
    h2 = jnp.maximum(h2 + b1_ref[...], 0.0)

    # ---- fc2: cat(h1, h1*h2, h2) @ W2 == h1@W2a + (h1*h2)@W2b + h2@W2c -----
    z = (jnp.dot(h1.astype(compute_dtype), w2a_ref[...],
                 preferred_element_type=f32)
         + jnp.dot((h1 * h2).astype(compute_dtype), w2b_ref[...],
                   preferred_element_type=f32)
         + jnp.dot(h2.astype(compute_dtype), w2c_ref[...],
                   preferred_element_type=f32))
    z = jnp.maximum(z + b2_ref[...], 0.0)

    # ---- fc3 into a lane-dense (padded to 128) output slab ------------------
    out = (jnp.dot(z.astype(compute_dtype), w3_ref[...],
                   preferred_element_type=f32)
           + b3_ref[...])
    out_ref[...] = out.astype(out_ref.dtype)


def compare_net(x1, x2, params, *, batch_tile=512, compute_dtype=jnp.bfloat16):
    """CompareNet forward.  params = (w1, b1, w2, b2, w3, b3) with weights stored
    as (in, out), i.e. y = x @ W + b  (same math as PyTorch's x @ W.T + b)."""
    B, D = x1.shape
    w1, b1, w2, b2, w3, b3 = params
    H = w1.shape[1]
    O = w2.shape[1]
    n_out = w3.shape[1]
    assert w2.shape[0] == 3 * H and w3.shape[0] == O

    # Batch tile: multiple of 8, large enough to amortize per-grid-step cost;
    # never larger than the (padded) batch.
    tb = min(_round_up(batch_tile, 8), _round_up(B, 8))
    B_pad = _round_up(B, tb)
    if B_pad != B:
        pad = ((0, B_pad - B), (0, 0))
        x1 = jnp.pad(x1, pad)
        x2 = jnp.pad(x2, pad)

    # Lane-dense output path: pad fc3 to a 128-wide slab, slice back outside.
    n_out_pad = _round_up(max(n_out, 128), 128)
    w3p = jnp.zeros((O, n_out_pad), jnp.float32).at[:, :n_out].set(
        w3.astype(jnp.float32))
    b3p = jnp.zeros((1, n_out_pad), jnp.float32).at[:, :n_out].set(
        b3.reshape(1, -1).astype(jnp.float32))

    # Matmul operands in compute_dtype (bf16 by default); biases stay f32.
    # W2 is pre-split along K into the three H-sized blocks that multiply
    # h1, h1*h2, h2 respectively (avoids the in-kernel concat copy).
    w1c = w1.astype(compute_dtype)
    w2a = w2[0 * H:1 * H, :].astype(compute_dtype)
    w2b = w2[1 * H:2 * H, :].astype(compute_dtype)
    w2c = w2[2 * H:3 * H, :].astype(compute_dtype)
    w3c = w3p.astype(compute_dtype)
    b1c = b1.reshape(1, -1).astype(jnp.float32)
    b2c = b2.reshape(1, -1).astype(jnp.float32)

    grid = (B_pad // tb,)
    x_spec = pl.BlockSpec((tb, D), lambda i: (i, 0))
    full = lambda a: pl.BlockSpec(a.shape, lambda i: (0, 0))

    kernel = functools.partial(comparenet_kernel, compute_dtype=compute_dtype)

    out_padded = pl.pallas_call(
        kernel,
        out_shape=jax.ShapeDtypeStruct((B_pad, n_out_pad), jnp.float32),
        grid_spec=pltpu.PrefetchScalarGridSpec(
            num_scalar_prefetch=0,
            grid=grid,
            in_specs=[
                x_spec, x_spec,                       # x1, x2 batch tiles
                full(w1c), full(b1c),                 # fc1 (resident)
                full(w2a), full(w2b), full(w2c),      # fc2 split (resident)
                full(b2c),
                full(w3c), full(b3p),                 # fc3 (lane-padded, resident)
            ],
            out_specs=pl.BlockSpec((tb, n_out_pad), lambda i: (i, 0)),
        ),
        compiler_params=pltpu.CompilerParams(
            dimension_semantics=("parallel",)),
    )(x1, x2, w1c, b1c, w2a, w2b, w2c, b2c, w3c, b3p)

    return out_padded[:B, :n_out]


def compare_net_ref(x1, x2, params):
    """Pure-JAX reference mirroring the PyTorch forward (all f32)."""
    w1, b1, w2, b2, w3, b3 = params
    h1 = jnp.maximum(x1 @ w1 + b1, 0.0)
    h2 = jnp.maximum(x2 @ w1 + b1, 0.0)
    cat = jnp.concatenate([h1, h1 * h2, h2], axis=1)
    z = jnp.maximum(cat @ w2 + b2, 0.0)
    return z @ w3 + b3


def init_params(key, input_dim, hidden_dim, output_dim):
    ks = jax.random.split(key, 6)
    scale = lambda fan_in: 1.0 / jnp.sqrt(jnp.float32(fan_in))
    w1 = jax.random.normal(ks[0], (input_dim, hidden_dim), jnp.float32) * scale(input_dim)
    b1 = jax.random.normal(ks[1], (1, hidden_dim), jnp.float32) * 0.01
    w2 = jax.random.normal(ks[2], (3 * hidden_dim, output_dim), jnp.float32) * scale(3 * hidden_dim)
    b2 = jax.random.normal(ks[3], (1, output_dim), jnp.float32) * 0.01
    w3 = jax.random.normal(ks[4], (output_dim, 2), jnp.float32) * scale(output_dim)
    b3 = jax.random.normal(ks[5], (1, 2), jnp.float32) * 0.01
    return (w1, b1, w2, b2, w3, b3)


if __name__ == "__main__":
    # Small, module-consistent shapes: input_dim=32, hidden=128, output=64.
    INPUT_DIM, HIDDEN_DIM, OUTPUT_DIM = 32, 128, 64

    key = jax.random.PRNGKey(0)
    k_x1, k_x2, k_p = jax.random.split(key, 3)
    params = init_params(k_p, INPUT_DIM, HIDDEN_DIM, OUTPUT_DIM)

    # --- case 1: small non-multiple-of-8 batch (exercises padding, 1 grid step)
    B = 20
    x1 = jax.random.normal(k_x1, (B, INPUT_DIM), jnp.float32)
    x2 = jax.random.normal(k_x2, (B, INPUT_DIM), jnp.float32)
    ref = compare_net_ref(x1, x2, params)

    out_f32 = jax.block_until_ready(
        compare_net(x1, x2, params, batch_tile=256, compute_dtype=jnp.float32))
    assert out_f32.shape == (B, 2)
    assert jnp.allclose(out_f32, ref, atol=1e-4, rtol=1e-4), "f32 path mismatch"

    out_bf16 = jax.block_until_ready(
        compare_net(x1, x2, params, batch_tile=256))  # bf16 MXU operands
    assert out_bf16.shape == (B, 2)
    assert jnp.allclose(out_bf16, ref, atol=6e-2, rtol=6e-2), "bf16 path mismatch"

    # --- case 2: multi-tile grid path (B > batch_tile, padding + pipelining)
    B2 = 300
    x1b = jax.random.normal(jax.random.PRNGKey(1), (B2, INPUT_DIM), jnp.float32)
    x2b = jax.random.normal(jax.random.PRNGKey(2), (B2, INPUT_DIM), jnp.float32)
    refb = compare_net_ref(x1b, x2b, params)
    outb = jax.block_until_ready(
        compare_net(x1b, x2b, params, batch_tile=128, compute_dtype=jnp.float32))
    assert outb.shape == (B2, 2)
    assert jnp.allclose(outb, refb, atol=1e-4, rtol=1e-4), "multi-tile mismatch"

    print("KERNEL_OK")
</pallas_src>

<mosaic_0001>
module attributes {stable_mosaic.version = 11 : i64} {
  func.func @comparenet_kernel(%arg0: i32, %arg1: memref<24x32xf32, #tpu.memory_space<vmem>>, %arg2: memref<24x32xf32, #tpu.memory_space<vmem>>, %arg3: memref<32x128xf32, #tpu.memory_space<vmem>>, %arg4: memref<1x128xf32, #tpu.memory_space<vmem>>, %arg5: memref<128x64xf32, #tpu.memory_space<vmem>>, %arg6: memref<128x64xf32, #tpu.memory_space<vmem>>, %arg7: memref<128x64xf32, #tpu.memory_space<vmem>>, %arg8: memref<1x64xf32, #tpu.memory_space<vmem>>, %arg9: memref<64x128xf32, #tpu.memory_space<vmem>>, %arg10: memref<1x128xf32, #tpu.memory_space<vmem>>, %arg11: memref<24x128xf32, #tpu.memory_space<vmem>>) attributes {dimension_semantics = [#tpu.dimension_semantics<parallel>], iteration_bounds = array<i64: 1>, scalar_prefetch = 0 : i64, scratch_operands = 0 : i64, tpu.core_type = #tpu.core_type<tc>, window_params = [{transform_indices = @transform_0, window_bounds = array<i64: 24, 32>}, {transform_indices = @transform_1, window_bounds = array<i64: 24, 32>}, {pipeline_mode = #tpu.pipeline_mode<synchronous>, transform_indices = @transform_2, window_bounds = array<i64: 32, 128>}, {pipeline_mode = #tpu.pipeline_mode<synchronous>, transform_indices = @transform_3, window_bounds = array<i64: 1, 128>}, {pipeline_mode = #tpu.pipeline_mode<synchronous>, transform_indices = @transform_4, window_bounds = array<i64: 128, 64>}, {pipeline_mode = #tpu.pipeline_mode<synchronous>, transform_indices = @transform_5, window_bounds = array<i64: 128, 64>}, {pipeline_mode = #tpu.pipeline_mode<synchronous>, transform_indices = @transform_6, window_bounds = array<i64: 128, 64>}, {pipeline_mode = #tpu.pipeline_mode<synchronous>, transform_indices = @transform_7, window_bounds = array<i64: 1, 64>}, {pipeline_mode = #tpu.pipeline_mode<synchronous>, transform_indices = @transform_8, window_bounds = array<i64: 64, 128>}, {pipeline_mode = #tpu.pipeline_mode<synchronous>, transform_indices = @transform_9, window_bounds = array<i64: 1, 128>}, {transform_indices = @transform_10, window_bounds = array<i64: 24, 128>}]} {
    %c0 = arith.constant 0 : index
    %c0_0 = arith.constant 0 : index
    %0 = vector.load %arg1[%c0, %c0_0] : memref<24x32xf32, #tpu.memory_space<vmem>>, vector<24x32xf32>
    %c0_1 = arith.constant 0 : index
    %c0_2 = arith.constant 0 : index
    %1 = vector.load %arg3[%c0_1, %c0_2] : memref<32x128xf32, #tpu.memory_space<vmem>>, vector<32x128xf32>
    %cst = arith.constant dense<0.000000e+00> : vector<24x128xf32>
    %2 = tpu.matmul %0, %1, %cst {dimension_numbers = #tpu.dot_dimension_numbers<[1], [0], [0], [1], [0, 0, 1, 1], [], []>} : vector<24x32xf32>, vector<32x128xf32>, vector<24x128xf32> -> vector<24x128xf32>
    %c0_3 = arith.constant 0 : index
    %c0_4 = arith.constant 0 : index
    %3 = vector.load %arg2[%c0_3, %c0_4] : memref<24x32xf32, #tpu.memory_space<vmem>>, vector<24x32xf32>
    %c0_5 = arith.constant 0 : index
    %c0_6 = arith.constant 0 : index
    %4 = vector.load %arg3[%c0_5, %c0_6] : memref<32x128xf32, #tpu.memory_space<vmem>>, vector<32x128xf32>
    %cst_7 = arith.constant dense<0.000000e+00> : vector<24x128xf32>
    %5 = tpu.matmul %3, %4, %cst_7 {dimension_numbers = #tpu.dot_dimension_numbers<[1], [0], [0], [1], [0, 0, 1, 1], [], []>} : vector<24x32xf32>, vector<32x128xf32>, vector<24x128xf32> -> vector<24x128xf32>
    %c0_8 = arith.constant 0 : index
    %c0_9 = arith.constant 0 : index
    %6 = vector.load %arg4[%c0_8, %c0_9] : memref<1x128xf32, #tpu.memory_space<vmem>>, vector<1x128xf32>
    %7 = vector.broadcast %6 : vector<1x128xf32> to vector<24x128xf32>
    %8 = arith.addf %2, %7 : vector<24x128xf32>
    %cst_10 = arith.constant 0.000000e+00 : f32
    %9 = vector.broadcast %cst_10 : f32 to vector<24x128xf32>
    %10 = arith.maximumf %8, %9 : vector<24x128xf32>
    %c0_11 = arith.constant 0 : index
    %c0_12 = arith.constant 0 : index
    %11 = vector.load %arg4[%c0_11, %c0_12] : memref<1x128xf32, #tpu.memory_space<vmem>>, vector<1x128xf32>
    %12 = vector.broadcast %11 : vector<1x128xf32> to vector<24x128xf32>
    %13 = arith.addf %5, %12 : vector<24x128xf32>
    %cst_13 = arith.constant 0.000000e+00 : f32
    %14 = vector.broadcast %cst_13 : f32 to vector<24x128xf32>
    %15 = arith.maximumf %13, %14 : vector<24x128xf32>
    %c0_14 = arith.constant 0 : index
    %c0_15 = arith.constant 0 : index
    %16 = vector.load %arg5[%c0_14, %c0_15] : memref<128x64xf32, #tpu.memory_space<vmem>>, vector<128x64xf32>
    %cst_16 = arith.constant dense<0.000000e+00> : vector<24x64xf32>
    %17 = tpu.matmul %10, %16, %cst_16 {dimension_numbers = #tpu.dot_dimension_numbers<[1], [0], [0], [1], [0, 0, 1, 1], [], []>} : vector<24x128xf32>, vector<128x64xf32>, vector<24x64xf32> -> vector<24x64xf32>
    %18 = arith.mulf %10, %15 : vector<24x128xf32>
    %c0_17 = arith.constant 0 : index
    %c0_18 = arith.constant 0 : index
    %19 = vector.load %arg6[%c0_17, %c0_18] : memref<128x64xf32, #tpu.memory_space<vmem>>, vector<128x64xf32>
    %cst_19 = arith.constant dense<0.000000e+00> : vector<24x64xf32>
    %20 = tpu.matmul %18, %19, %cst_19 {dimension_numbers = #tpu.dot_dimension_numbers<[1], [0], [0], [1], [0, 0, 1, 1], [], []>} : vector<24x128xf32>, vector<128x64xf32>, vector<24x64xf32> -> vector<24x64xf32>
    %21 = arith.addf %17, %20 : vector<24x64xf32>
    %c0_20 = arith.constant 0 : index
    %c0_21 = arith.constant 0 : index
    %22 = vector.load %arg7[%c0_20, %c0_21] : memref<128x64xf32, #tpu.memory_space<vmem>>, vector<128x64xf32>
    %cst_22 = arith.constant dense<0.000000e+00> : vector<24x64xf32>
    %23 = tpu.matmul %15, %22, %cst_22 {dimension_numbers = #tpu.dot_dimension_numbers<[1], [0], [0], [1], [0, 0, 1, 1], [], []>} : vector<24x128xf32>, vector<128x64xf32>, vector<24x64xf32> -> vector<24x64xf32>
    %24 = arith.addf %21, %23 : vector<24x64xf32>
    %c0_23 = arith.constant 0 : index
    %c0_24 = arith.constant 0 : index
    %25 = vector.load %arg8[%c0_23, %c0_24] : memref<1x64xf32, #tpu.memory_space<vmem>>, vector<1x64xf32>
    %26 = vector.broadcast %25 : vector<1x64xf32> to vector<24x64xf32>
    %27 = arith.addf %24, %26 : vector<24x64xf32>
    %cst_25 = arith.constant 0.000000e+00 : f32
    %28 = vector.broadcast %cst_25 : f32 to vector<24x64xf32>
    %29 = arith.maximumf %27, %28 : vector<24x64xf32>
    %c0_26 = arith.constant 0 : index
    %c0_27 = arith.constant 0 : index
    %30 = vector.load %arg9[%c0_26, %c0_27] : memref<64x128xf32, #tpu.memory_space<vmem>>, vector<64x128xf32>
    %cst_28 = arith.constant dense<0.000000e+00> : vector<24x128xf32>
    %31 = tpu.matmul %29, %30, %cst_28 {dimension_numbers = #tpu.dot_dimension_numbers<[1], [0], [0], [1], [0, 0, 1, 1], [], []>} : vector<24x64xf32>, vector<64x128xf32>, vector<24x128xf32> -> vector<24x128xf32>
    %c0_29 = arith.constant 0 : index
    %c0_30 = arith.constant 0 : index
    %32 = vector.load %arg10[%c0_29, %c0_30] : memref<1x128xf32, #tpu.memory_space<vmem>>, vector<1x128xf32>
    %33 = vector.broadcast %32 : vector<1x128xf32> to vector<24x128xf32>
    %34 = arith.addf %31, %33 : vector<24x128xf32>
    %c0_31 = arith.constant 0 : index
    %c0_32 = arith.constant 0 : index
    %35 = vector.load %arg11[%c0_31, %c0_32] : memref<24x128xf32, #tpu.memory_space<vmem>>, vector<24x128xf32>
    tpu.vector_store %arg11[%c0_31, %c0_32], %34 {strides = array<i32>} : memref<24x128xf32, #tpu.memory_space<vmem>>, vector<24x128xf32>,
    return
  }
  func.func @transform_0(%arg0: i32) -> (i32, i32) {
    %c0_i32 = arith.constant 0 : i32
    %c0_i32_0 = arith.constant 0 : i32
    return %arg0, %c0_i32 : i32, i32
  }
  func.func @transform_1(%arg0: i32) -> (i32, i32) {
    %c0_i32 = arith.constant 0 : i32
    %c0_i32_0 = arith.constant 0 : i32
    return %arg0, %c0_i32 : i32, i32
  }
  func.func @transform_2(%arg0: i32) -> (i32, i32) {
    %c0_i32 = arith.constant 0 : i32
    %c0_i32_0 = arith.constant 0 : i32
    %c0_i32_1 = arith.constant 0 : i32
    return %c0_i32, %c0_i32_0 : i32, i32
  }
  func.func @transform_3(%arg0: i32) -> (i32, i32) {
    %c0_i32 = arith.constant 0 : i32
    %c0_i32_0 = arith.constant 0 : i32
    %c0_i32_1 = arith.constant 0 : i32
    return %c0_i32, %c0_i32_0 : i32, i32
  }
  func.func @transform_4(%arg0: i32) -> (i32, i32) {
    %c0_i32 = arith.constant 0 : i32
    %c0_i32_0 = arith.constant 0 : i32
    %c0_i32_1 = arith.constant 0 : i32
    return %c0_i32, %c0_i32_0 : i32, i32
  }
  func.func @transform_5(%arg0: i32) -> (i32, i32) {
    %c0_i32 = arith.constant 0 : i32
    %c0_i32_0 = arith.constant 0 : i32
    %c0_i32_1 = arith.constant 0 : i32
    return %c0_i32, %c0_i32_0 : i32, i32
  }
  func.func @transform_6(%arg0: i32) -> (i32, i32) {
    %c0_i32 = arith.constant 0 : i32
    %c0_i32_0 = arith.constant 0 : i32
    %c0_i32_1 = arith.constant 0 : i32
    return %c0_i32, %c0_i32_0 : i32, i32
  }
  func.func @transform_7(%arg0: i32) -> (i32, i32) {
    %c0_i32 = arith.constant 0 : i32
    %c0_i32_0 = arith.constant 0 : i32
    %c0_i32_1 = arith.constant 0 : i32
    return %c0_i32, %c0_i32_0 : i32, i32
  }
  func.func @transform_8(%arg0: i32) -> (i32, i32) {
    %c0_i32 = arith.constant 0 : i32
    %c0_i32_0 = arith.constant 0 : i32
    %c0_i32_1 = arith.constant 0 : i32
    return %c0_i32, %c0_i32_0 : i32, i32
  }
  func.func @transform_9(%arg0: i32) -> (i32, i32) {
    %c0_i32 = arith.constant 0 : i32
    %c0_i32_0 = arith.constant 0 : i32
    %c0_i32_1 = arith.constant 0 : i32
    return %c0_i32, %c0_i32_0 : i32, i32
  }
  func.func @transform_10(%arg0: i32) -> (i32, i32) {
    %c0_i32 = arith.constant 0 : i32
    %c0_i32_0 = arith.constant 0 : i32
    return %arg0, %c0_i32 : i32, i32
  }
}

</mosaic_0001>

<bundles_post_ra>
// kernel: tpu_custom_call.1
= control target key start
LH: loop header
LB: loop body
LE: loop exit
PB: predicated region body
PF: predicated region fallthrough
CT: control target
= control target key end

     0   :  { %v972_v1 = vmov 0.0   ;;  %vm973_vm0 = vmmov 0   ;;  %vm53_vm1 = vcmask 261120   ;;  %s1361_s0 = inlined_call_operand.vmem [shape: f32[24,32], index: 0, kind: input, shape index: {}]   ;;  %s1362_s1 = inlined_call_operand.vmem [shape: f32[24,32], index: 1, kind: input, shape index: {}]   ;;  %s1363_s2 = inlined_call_operand.vmem [shape: f32[32,128], index: 2, kind: input, shape index: {}]   ;;  %s1364_s3 = inlined_call_operand.vmem [shape: f32[1,128], index: 3, kind: input, shape index: {}]   ;;  %s1365_s4 = inlined_call_operand.vmem [shape: f32[128,64], index: 4, kind: input, shape index: {}]   ;;  %s1366_s5 = inlined_call_operand.vmem [shape: f32[128,64], index: 5, kind: input, shape index: {}]   ;;  %s1367_s6 = inlined_call_operand.vmem [shape: f32[128,64], index: 6, kind: input, shape index: {}]   ;;  %s1368_s7 = inlined_call_operand.vmem [shape: f32[1,64], index: 7, kind: input, shape index: {}]   ;;  %s1369_s8 = inlined_call_operand.vmem [shape: f32[64,128], index: 8, kind: input, shape index: {}]   ;;  %s1370_s9 = inlined_call_operand.vmem [shape: f32[1,128], index: 9, kind: input, shape index: {}]   ;;  %s1371_s10 = inlined_call_operand.hbm [shape: f32[24,128], index: 10, kind: output, shape index: {}]  }
   0x1   :  { %v42_v0 = vld [vmem:[%s1363_s2 + $0x18] sm:$0xff]  ;;  %763 = vmatprep.subr.mxu1 %v972_v1  ;;  %v41_v2 = vld [vmem:[%s1363_s2 + $0x10] sm:$0xff]  ;;  %771 = vmatprep.mubr.msk.f32.mxu1 %vm973_vm0, %v972_v1  ;;  %v40_v3 = vld [vmem:[%s1363_s2 + $0x8] sm:$0xff] }
   0x2   :  { %764 = vmatpush3.msra.mxu1 %v42_v0  ;;  %797 = vmatprep.subr.mxu0 %v972_v1  ;;  %v39_v4 = vld [vmem:[%s1363_s2] sm:$0xff]  ;;  %v272_v5 = vld [vmem:[%s1366_s5 + $0x78] sm:$0xff]  ;;  %v271_v7 = vld [vmem:[%s1366_s5 + $0x70] sm:$0xff] }
   0x3   :  { %765 = vmatprep.subr.mxu1 %v972_v1  ;;  %829 = vmatprep.mubr.msk.f32.mxu0 %vm973_vm0, %v972_v1  ;;  %v36_v6 = vld [vmem:[%s1361_s0] sm:$0xff]  ;;  %v270_v8 = vld [vmem:[%s1366_s5 + $0x68] sm:$0xff] }
   0x4   :  { %766 = vmatpush3.msra.mxu1 %v41_v2  ;;  %798 = vmatpush3.msra.mxu0 %v272_v5  ;;  %v37_v9 = vld [vmem:[%s1361_s0 + $0x8] sm:$0xff] }
   0x5   :  { %767 = vmatprep.subr.mxu1 %v972_v1  ;;  %799 = vmatprep.subr.mxu0 %v972_v1 }
   0x6   :  { %768 = vmatpush3.msra.mxu1 %v40_v3  ;;  %800 = vmatpush3.msra.mxu0 %v271_v7 }
   0x7   :  { %769 = vmatprep.subr.mxu1 %v972_v1 }
   0x8   :  { %770 = vmatpush3.msra.mxu1 %v39_v4 }
   0x9   :  { %772 = vmatmul.mubr.msk.f32.vlgmr.msra.gmra.mxu1 %vm53_vm1, %v36_v6  ;;  %780 = vmatprep.subr.mxu1 %v972_v1 }
   0xa   :  { %781 = vmatpush3.msra.mxu1 %v42_v0  ;;  %774 = vmatprep.mubr.msk.f32.mxu1 %vm973_vm0, %v972_v1 }
   0xb   :  { %15 = vsyncpa [#allocation3], 0  ;;  %782 = vmatprep.subr.mxu1 %v972_v1  ;;  %801 = vmatprep.subr.mxu0 %v972_v1  ;;  %v269_v10 = vld [vmem:[%s1366_s5 + $0x60] sm:$0xff]  ;;  %v38_v11 = vld [vmem:[%s1361_s0 + $0x10] sm:$0xff]  ;;  %vm560_vm2 = vcmask 523264   ;;  %s974_s2 = smov [#allocation2]  }
   0xc   :  { %783 = vmatpush3.msra.mxu1 %v41_v2  ;;  %802 = vmatpush3.msra.mxu0 %v270_v8  ;;  %v268_v12 = vld [vmem:[%s1366_s5 + $0x58] sm:$0xff]  ;;  %v43_v13 = vld [vmem:[%s1362_s1] sm:$0xff]  ;;  %v267_v14 = vld [vmem:[%s1366_s5 + $0x50] sm:$0xff]  ;;  %s658_s27 = sshll.u32 %s974_s2, 4  ;;  %s659_s27 = int_to_ptr.vmem [resolvable:$true] %s658_s27 }
   0xd   :  { %775 = vmatmul.mubr.msk.f32.gmra.mxu1 %vm53_vm1, %v37_v9  ;;  %784 = vmatprep.subr.mxu1 %v972_v1  ;;  %v253_v15 = vld [vmem:[%s1365_s4 + $0x78] sm:$0xff]  ;;  %v252_v16 = vld [vmem:[%s1365_s4 + $0x70] sm:$0xff]  ;;  %v266_v17 = vld [vmem:[%s1366_s5 + $0x48] sm:$0xff]  ;;  %s950_s28 = scalar_lea.vmem %s659_s27, 384  ;;  %p955_p1 = scmp.lt.s32.totalorder %s659_s27, %s659_s27 }
   0xe   :  { %777 = vmatprep.mubr.msk.f32.mxu1 %vm973_vm0, %v972_v1  ;;  %785 = vmatpush3.msra.mxu1 %v40_v3  ;;  %v44_v18 = vld [vmem:[%s1362_s1 + $0x8] sm:$0xff]  ;;  %v250_v20 = vld [vmem:[%s1365_s4 + $0x60] sm:$0xff]  ;;  %v45_v21 = vld [vmem:[%s1362_s1 + $0x10] sm:$0xff]  ;;  %p951_p0 = scmp.ne.s32.totalorder %s659_s27, %s950_s28  ;;  %p956_p2 = scmp.lt.s32.totalorder %s950_s28, %s950_s28 }
   0xf   :  { %786 = vmatprep.subr.mxu1 %v972_v1  ;;  %803 = vmatprep.subr.mxu0 %v972_v1  ;;  %v251_v19 = vld [vmem:[%s1365_s4 + $0x68] sm:$0xff]  ;;  %v249_v22 = vld [vmem:[%s1365_s4 + $0x58] sm:$0xff]  ;;  %v248_v23 = vld [vmem:[%s1365_s4 + $0x50] sm:$0xff] }
  0x10   :  { %787 = vmatpush3.msra.mxu1 %v39_v4  ;;  %804 = vmatpush3.msra.mxu0 %v269_v10  ;;  %v247_v24 = vld [vmem:[%s1365_s4 + $0x48] sm:$0xff]  ;;  %v246_v25 = vld [vmem:[%s1365_s4 + $0x40] sm:$0xff]  ;;  %v245_v26 = vld [vmem:[%s1365_s4 + $0x38] sm:$0xff]  ;;  %p957_p3 = por %p956_p2, %p955_p1 }
  0x11   :  { %778 = vmatmul.mubr.msk.f32.gmra.mxu1 %vm53_vm1, %v38_v11  ;;  %838 = vmatprep.subr.mxu1 %v972_v1  ;;  %v244_v27 = vld [vmem:[%s1365_s4 + $0x30] sm:$0xff]  ;;  %v243_v28 = vld [vmem:[%s1365_s4 + $0x28] sm:$0xff]  ;;  %v242_v29 = vld [vmem:[%s1365_s4 + $0x20] sm:$0xff] }
  0x12   :  { %788 = vmatprep.mubr.msk.f32.mxu1 %vm973_vm0, %v972_v1  ;;  %805 = vmatprep.subr.mxu0 %v972_v1  ;;  %v241_v30 = vld [vmem:[%s1365_s4 + $0x18] sm:$0xff]  ;;  %v240_v31 = vld [vmem:[%s1365_s4 + $0x10] sm:$0xff]  ;;  %v265_v32 = vld [vmem:[%s1366_s5 + $0x40] sm:$0xff]  ;;  %p958_p4 = pnand %p957_p3, %p951_p0 }
  0x13   :  { %806 = vmatpush3.msra.mxu0 %v268_v12  ;;  %v239_v33 = vld [vmem:[%s1365_s4 + $0x8] sm:$0xff]  ;;  %v264_v34 = vld [vmem:[%s1366_s5 + $0x38] sm:$0xff]  ;;  %v238_v35 = vld [vmem:[%s1365_s4] sm:$0xff] }
  0x14   :  { %807 = vmatprep.subr.mxu0 %v972_v1  ;;  %v263_v36 = vld [vmem:[%s1366_s5 + $0x30] sm:$0xff]  ;;  %v262_v37 = vld [vmem:[%s1366_s5 + $0x28] sm:$0xff]  ;;  %v261_v38 = vld [vmem:[%s1366_s5 + $0x20] sm:$0xff] }
  0x15   :  { %789 = vmatmul.mubr.msk.f32.vlgmr.msra.gmra.mxu1 %vm53_vm1, %v43_v13  ;;  %808 = vmatpush3.msra.mxu0 %v267_v14  ;;  %v260_v39 = vld [vmem:[%s1366_s5 + $0x18] sm:$0xff]  ;;  %v259_v40 = vld [vmem:[%s1366_s5 + $0x10] sm:$0xff]  ;;  %v258_v41 = vld [vmem:[%s1366_s5 + $0x8] sm:$0xff] }
  0x16   :  { %791 = vmatprep.mubr.msk.f32.mxu1 %vm973_vm0, %v972_v1  ;;  %839 = vmatpush3.msra.mxu1 %v253_v15  ;;  %v257_v42 = vld [vmem:[%s1366_s5] sm:$0xff]  ;;  %v448_v63 = vld [vmem:[%s1367_s6 + $0x78] sm:$0xff]  ;;  %v447_v3 = vld [vmem:[%s1367_s6 + $0x70] sm:$0xff] }
  0x17   :  { %840 = vmatprep.subr.mxu1 %v972_v1  ;;  %809 = vmatprep.subr.mxu0 %v972_v1  ;;  %v669_v43 = vld [vmem:[%s1364_s3] ss:$0 sm:$0xff]  ;;  %v446_v7 = vld [vmem:[%s1367_s6 + $0x68] sm:$0xff]  ;;  %v444_v12 = vld [vmem:[%s1367_s6 + $0x58] sm:$0xff] }
  0x18   :  { %841 = vmatpush3.msra.mxu1 %v252_v16  ;;  %810 = vmatpush3.msra.mxu0 %v266_v17  ;;  %v445_v10 = vld [vmem:[%s1367_s6 + $0x60] sm:$0xff]  ;;  %v443_v13 = vld [vmem:[%s1367_s6 + $0x50] sm:$0xff]  ;;  %v442_v14 = vld [vmem:[%s1367_s6 + $0x48] sm:$0xff] }
  0x19   :  { %792 = vmatmul.mubr.msk.f32.gmra.mxu1 %vm53_vm1, %v44_v18  ;;  %842 = vmatprep.subr.mxu1 %v972_v1  ;;  %v441_v15 = vld [vmem:[%s1367_s6 + $0x40] sm:$0xff]  ;;  %v440_v16 = vld [vmem:[%s1367_s6 + $0x38] sm:$0xff]  ;;  %v439_v17 = vld [vmem:[%s1367_s6 + $0x30] sm:$0xff] }
  0x1a   :  { %794 = vmatprep.mubr.msk.f32.mxu1 %vm973_vm0, %v972_v1  ;;  %843 = vmatpush3.msra.mxu1 %v251_v19  ;;  %v438_v18 = vld [vmem:[%s1367_s6 + $0x28] sm:$0xff]  ;;  %v437_v19 = vld [vmem:[%s1367_s6 + $0x20] sm:$0xff] }
  0x1b   :  { %844 = vmatprep.subr.mxu1 %v972_v1  ;;  %811 = vmatprep.subr.mxu0 %v972_v1 }
  0x1c   :  { %845 = vmatpush3.msra.mxu1 %v250_v20  ;;  %812 = vmatpush3.msra.mxu0 %v265_v32  ;;  %v436_v20 = vld [vmem:[%s1367_s6 + $0x18] sm:$0xff] }
  0x1d   :  { %795 = vmatmul.mubr.msk.f32.gmra.mxu1 %vm53_vm1, %v45_v21  ;;  %846 = vmatprep.subr.mxu1 %v972_v1  ;;  %v435_v21 = vld [vmem:[%s1367_s6 + $0x10] sm:$0xff] }
  0x1e   :  { %847 = vmatpush3.msra.mxu1 %v249_v22  ;;  %870 = vmatprep.mubr.msk.f32.mxu1 %vm973_vm0, %v972_v1  ;;  %v434_v22 = vld [vmem:[%s1367_s6 + $0x8] sm:$0xff] }
  0x1f   :  { %848 = vmatprep.subr.mxu1 %v972_v1  ;;  %813 = vmatprep.subr.mxu0 %v972_v1 }
  0x20   :  { %849 = vmatpush3.msra.mxu1 %v248_v23  ;;  %814 = vmatpush3.msra.mxu0 %v264_v34  ;;  %v433_v23 = vld [vmem:[%s1367_s6] sm:$0xff] }
  0x21   :  { %850 = vmatprep.subr.mxu1 %v972_v1  ;;  %815 = vmatprep.subr.mxu0 %v972_v1 }
  0x22   :  { %851 = vmatpush3.msra.mxu1 %v247_v24  ;;  %816 = vmatpush3.msra.mxu0 %v263_v36  ;;  %v552_v24 = vld [vmem:[%s1369_s8 + $0x38] sm:$0xff] }
  0x23   :  { %852 = vmatprep.subr.mxu1 %v972_v1  ;;  %817 = vmatprep.subr.mxu0 %v972_v1 }
  0x24   :  { %853 = vmatpush3.msra.mxu1 %v246_v25  ;;  %818 = vmatpush3.msra.mxu0 %v262_v37  ;;  %v551_v25 = vld [vmem:[%s1369_s8 + $0x30] sm:$0xff] }
  0x25   :  { %854 = vmatprep.subr.mxu1 %v972_v1  ;;  %819 = vmatprep.subr.mxu0 %v972_v1 }
  0x26   :  { %855 = vmatpush3.msra.mxu1 %v245_v26  ;;  %820 = vmatpush3.msra.mxu0 %v261_v38  ;;  %v550_v26 = vld [vmem:[%s1369_s8 + $0x28] sm:$0xff] }
  0x27   :  { %856 = vmatprep.subr.mxu1 %v972_v1  ;;  %821 = vmatprep.subr.mxu0 %v972_v1 }
  0x28   :  { %857 = vmatpush3.msra.mxu1 %v244_v27  ;;  %822 = vmatpush3.msra.mxu0 %v260_v39  ;;  %v549_v27 = vld [vmem:[%s1369_s8 + $0x20] sm:$0xff] }
  0x29   :  { %858 = vmatprep.subr.mxu1 %v972_v1  ;;  %823 = vmatprep.subr.mxu0 %v972_v1 }
  0x2a   :  { %859 = vmatpush3.msra.mxu1 %v243_v28  ;;  %824 = vmatpush3.msra.mxu0 %v259_v40  ;;  %v548_v28 = vld [vmem:[%s1369_s8 + $0x18] sm:$0xff] }
  0x2b   :  { %860 = vmatprep.subr.mxu1 %v972_v1  ;;  %825 = vmatprep.subr.mxu0 %v972_v1 }
  0x2c   :  { %861 = vmatpush3.msra.mxu1 %v242_v29  ;;  %826 = vmatpush3.msra.mxu0 %v258_v41  ;;  %v547_v29 = vld [vmem:[%s1369_s8 + $0x10] sm:$0xff] }
  0x2d   :  { %862 = vmatprep.subr.mxu1 %v972_v1  ;;  %827 = vmatprep.subr.mxu0 %v972_v1 }
  0x2e   :  { %863 = vmatpush3.msra.mxu1 %v241_v30  ;;  %828 = vmatpush3.msra.mxu0 %v257_v42  ;;  %v546_v30 = vld [vmem:[%s1369_s8 + $0x8] sm:$0xff] }
  0x2f   :  { %864 = vmatprep.subr.mxu1 %v972_v1  ;;  %879 = vmatprep.subr.mxu0 %v972_v1 }
  0x30   :  { %865 = vmatpush3.msra.mxu1 %v240_v31  ;;  %v545_v31 = vld [vmem:[%s1369_s8] sm:$0xff] }
  0x31   :  { %866 = vmatprep.subr.mxu1 %v972_v1 }
  0x32   :  { %867 = vmatpush3.msra.mxu1 %v239_v33 }
  0x33   :  { %868 = vmatprep.subr.mxu1 %v972_v1 }
  0x34   :  { %869 = vmatpush3.msra.mxu1 %v238_v35 }
  0x35   :  { %920 = vmatprep.subr.mxu1 %v972_v1 }
  0xc9   :  { %v129_v44 = vpop.f32.mrf.mxu1 }
  0xca   :  { %v130_v45 = vadd.f32 %v669_v43, %v129_v44 }
  0xcb   :  { %v773_v46 = vpop.f32.mrf.mxu1 }
  0xcc   :  { %v143_v47 = vmax.f32 %v130_v45, 0.0  ;;  %v676_v46 = vld [vmem:[%s1368_s7] ss:$0 sm:$0xff] }
  0xcd   :  { %v134_v48 = vpop.f32.mrf.mxu1 }
  0xce   :  { %v135_v49 = vadd.f32 %v669_v43, %v134_v48  ;;  %871 = vmatmul.mubr.f32.vlgmr.msra.gmra.mxu1 %v143_v47 }
  0xcf   :  { %v776_v50 = vpop.f32.mrf.mxu1  ;;  %873 = vmatprep.mubr.msk.f32.mxu1 %vm973_vm0, %v972_v1  ;;  %921 = vmatpush3.msra.mxu1 %v552_v24 }
  0xd0   :  { %v144_v51 = vmax.f32 %v135_v49, 0.0  ;;  %922 = vmatprep.subr.mxu1 %v972_v1 }
  0xd1   :  { %v139_v52 = vpop.f32.mrf.mxu1  ;;  %923 = vmatpush3.msra.mxu1 %v551_v25 }
  0xd2   :  { %v140_v53 = vadd.f32 %v669_v43, %v139_v52  ;;  %874 = vmatmul.mubr.f32.gmra.mxu1 %v144_v51  ;;  %924 = vmatprep.subr.mxu1 %v972_v1 }
  0xd3   :  { %v779_v54 = vpop.f32.mrf.mxu1  ;;  %876 = vmatprep.mubr.msk.f32.mxu1 %vm973_vm0, %v972_v1  ;;  %925 = vmatpush3.msra.mxu1 %v550_v26 }
  0xd4   :  { %v145_v55 = vmax.f32 %v140_v53, 0.0  ;;  %926 = vmatprep.subr.mxu1 %v972_v1 }
  0xd5   :  { %v221_v56 = vpop.f32.mrf.mxu1  ;;  %927 = vmatpush3.msra.mxu1 %v549_v27 }
  0xd6   :  { %v1229_v57 = vadd.f32 %v669_v43, %v221_v56  ;;  %877 = vmatmul.mubr.f32.gmra.mxu1 %v145_v55  ;;  %928 = vmatprep.subr.mxu1 %v972_v1 }
  0xd7   :  { %v790_v58 = vpop.f32.mrf.mxu1  ;;  %936 = vmatprep.mubr.msk.f32.mxu1 %vm973_vm0, %v972_v1  ;;  %929 = vmatpush3.msra.mxu1 %v548_v28 }
  0xd8   :  { %v235_v59 = vmax.f32 %v1229_v57, 0.0  ;;  %930 = vmatprep.subr.mxu1 %v972_v1 }
  0xd9   :  { %v226_v60 = vpop.f32.mrf.mxu1  ;;  %931 = vmatpush3.msra.mxu1 %v547_v29 }
  0xda   :  { %v254_v61 = vmul.f32 %v235_v59, %v143_v47  ;;  %v1236_v62 = vadd.f32 %v669_v43, %v226_v60  ;;  %932 = vmatprep.subr.mxu1 %v972_v1 }
  0xdb   :  { %v793_v0 = vpop.f32.mrf.mxu1  ;;  %933 = vmatpush3.msra.mxu1 %v546_v30 }
  0xdc   :  { %v236_v2 = vmax.f32 %v1236_v62, 0.0  ;;  %830 = vmatmul.mubr.f32.vlgmr.msra.gmra.mxu0 %v254_v61  ;;  %934 = vmatprep.subr.mxu1 %v972_v1 }
  0xdd   :  { %880 = vmatpush3.msra.mxu0 %v448_v63  ;;  %v231_v4 = vpop.f32.mrf.mxu1  ;;  %832 = vmatprep.mubr.msk.f32.mxu0 %vm973_vm0, %v972_v1  ;;  %v677_v63 = vld [vmem:[%s1370_s9] ss:$0 sm:$0xff] }
  0xde   :  { %v255_v5 = vmul.f32 %v236_v2, %v144_v51  ;;  %v232_v6 = vadd.f32 %v669_v43, %v231_v4  ;;  %881 = vmatprep.subr.mxu0 %v972_v1  ;;  %935 = vmatpush3.msra.mxu1 %v545_v31 }
  0xdf   :  { %882 = vmatpush3.msra.mxu0 %v447_v3  ;;  %v796_v8 = vpop.f32.mrf.mxu1 }
  0xe0   :  { %v237_v9 = vmax.f32 %v232_v6, 0.0  ;;  %883 = vmatprep.subr.mxu0 %v972_v1  ;;  %833 = vmatmul.mubr.f32.gmra.mxu0 %v255_v5 }
  0xe1   :  { %884 = vmatpush3.msra.mxu0 %v446_v7  ;;  %835 = vmatprep.mubr.msk.f32.mxu0 %vm973_vm0, %v972_v1 }
  0xe2   :  { %v256_v11 = vmul.f32 %v237_v9, %v145_v55  ;;  %885 = vmatprep.subr.mxu0 %v972_v1 }
  0xe3   :  { %886 = vmatpush3.msra.mxu0 %v445_v10 }
  0xe4   :  { %887 = vmatprep.subr.mxu0 %v972_v1  ;;  %836 = vmatmul.mubr.f32.gmra.mxu0 %v256_v11 }
  0xe5   :  { %888 = vmatpush3.msra.mxu0 %v444_v12  ;;  %911 = vmatprep.mubr.msk.f32.mxu0 %vm973_vm0, %v972_v1 }
  0xe6   :  { %889 = vmatprep.subr.mxu0 %v972_v1 }
  0xe7   :  { %890 = vmatpush3.msra.mxu0 %v443_v13 }
  0xe8   :  { %891 = vmatprep.subr.mxu0 %v972_v1 }
  0xe9   :  { %892 = vmatpush3.msra.mxu0 %v442_v14 }
  0xea   :  { %893 = vmatprep.subr.mxu0 %v972_v1 }
  0xeb   :  { %894 = vmatpush3.msra.mxu0 %v441_v15 }
  0xec   :  { %895 = vmatprep.subr.mxu0 %v972_v1 }
  0xed   :  { %896 = vmatpush3.msra.mxu0 %v440_v16 }
  0xee   :  { %897 = vmatprep.subr.mxu0 %v972_v1 }
  0xef   :  { %898 = vmatpush3.msra.mxu0 %v439_v17 }
  0xf0   :  { %899 = vmatprep.subr.mxu0 %v972_v1 }
  0xf1   :  { %900 = vmatpush3.msra.mxu0 %v438_v18 }
  0xf2   :  { %901 = vmatprep.subr.mxu0 %v972_v1 }
  0xf3   :  { %902 = vmatpush3.msra.mxu0 %v437_v19 }
  0xf4   :  { %903 = vmatprep.subr.mxu0 %v972_v1 }
  0xf5   :  { %904 = vmatpush3.msra.mxu0 %v436_v20 }
  0xf6   :  { %905 = vmatprep.subr.mxu0 %v972_v1 }
  0xf7   :  { %906 = vmatpush3.msra.mxu0 %v435_v21 }
  0xf8   :  { %907 = vmatprep.subr.mxu0 %v972_v1 }
  0xf9   :  { %908 = vmatpush3.msra.mxu0 %v434_v22 }
  0xfa   :  { %909 = vmatprep.subr.mxu0 %v972_v1 }
  0xfb   :  { %910 = vmatpush3.msra.mxu0 %v433_v23 }
  0xfc   :  { %912 = vmatmul.mubr.f32.vlgmr.msra.gmra.mxu0 %v235_v59 }
  0xfd   :  { %914 = vmatprep.mubr.msk.f32.mxu0 %vm973_vm0, %v972_v1 }
 0x100   :  { %915 = vmatmul.mubr.f32.gmra.mxu0 %v236_v2 }
 0x101   :  { %917 = vmatprep.mubr.msk.f32.mxu0 %vm973_vm0, %v972_v1 }
 0x104   :  { %918 = vmatmul.mubr.f32.gmra.mxu0 %v237_v9 }
 0x18e   :  { %v419_v32 = vpop.f32.mrf.mxu1 }
 0x190   :  { %v872_v33 = vpop.f32.mrf.mxu1 }
 0x192   :  { %v424_v34 = vpop.f32.mrf.mxu1 }
 0x194   :  { %v875_v35 = vpop.f32.mrf.mxu1 }
 0x196   :  { %v429_v36 = vpop.f32.mrf.mxu1 }
 0x198   :  { %v878_v37 = vpop.f32.mrf.mxu1 }
 0x19c   :  { %v339_v38 = vpop.f32.mrf.mxu0 }
 0x19d   :  { %v420_v44 = vadd.f32 %v419_v32, %v339_v38 }
 0x19e   :  { %v831_v39 = vpop.f32.mrf.mxu0 }
 0x1a0   :  { %v344_v40 = vpop.f32.mrf.mxu0 }
 0x1a1   :  { %v425_v49 = vadd.f32 %v424_v34, %v344_v40 }
 0x1a2   :  { %v834_v41 = vpop.f32.mrf.mxu0 }
 0x1a4   :  { %v349_v42 = vpop.f32.mrf.mxu0 }
 0x1a5   :  { %v430_v55 = vadd.f32 %v429_v36, %v349_v42 }
 0x1a6   :  { %v837_v43 = vpop.f32.mrf.mxu0 }
 0x1bc   :  { %v515_v45 = vpop.f32.mrf.mxu0 }
 0x1bd   :  { %v529_v47 = vadd.f32 %v515_v45, %v420_v44 }
 0x1be   :  { %v913_v48 = vpop.f32.mrf.mxu0 }
 0x1bf   :  { %v539_v50 = vadd.f32 %v676_v46, %v529_v47 }
 0x1c0   :  { %v520_v51 = vpop.f32.mrf.mxu0 }
 0x1c1   :  { %v542_v52 = vmax.f32 %v539_v50, 0.0  ;;  %v530_v53 = vadd.f32 %v520_v51, %v425_v49 }
 0x1c2   :  { %v916_v54 = vpop.f32.mrf.mxu0 }
 0x1c3   :  { %v540_v56 = vadd.f32 %v676_v46, %v530_v53  ;;  %937 = vmatmul.mubr.msk.f32.vlgmr.msra.gmra.mxu1 %vm560_vm2, %v542_v52 }
 0x1c4   :  { %v525_v57 = vpop.f32.mrf.mxu0  ;;  %939 = vmatprep.mubr.msk.f32.mxu1 %vm973_vm0, %v972_v1 }
 0x1c5   :  { %v543_v58 = vmax.f32 %v540_v56, 0.0  ;;  %v531_v59 = vadd.f32 %v525_v57, %v430_v55 }
 0x1c6   :  { %v919_v60 = vpop.f32.mrf.mxu0 }
 0x1c7   :  { %v541_v61 = vadd.f32 %v676_v46, %v531_v59  ;;  %940 = vmatmul.mubr.msk.f32.gmra.mxu1 %vm560_vm2, %v543_v58 }
 0x1c8   :  { %942 = vmatprep.mubr.msk.f32.mxu1 %vm973_vm0, %v972_v1 }
 0x1c9   :  { %v544_v62 = vmax.f32 %v541_v61, 0.0 }
 0x1cb   :  { %943 = vmatmul.mubr.msk.f32.gmra.mxu1 %vm560_vm2, %v544_v62 }
 0x283   :  { %v636_v0 = vpop.f32.mrf.mxu1 }
 0x284   :  { %v637_v2 = vadd.f32 %v677_v63, %v636_v0 }
 0x285   :  { %v938_v3 = vpop.f32.mrf.mxu1 }
 0x286   :  { %650 = vst [vmem:[#allocation2] sm:$0xff] %v637_v2 }
 0x287   :  { %v641_v4 = vpop.f32.mrf.mxu1 }
 0x288   :  { %v642_v5 = vadd.f32 %v677_v63, %v641_v4 }
 0x289   :  { %v941_v6 = vpop.f32.mrf.mxu1 }
 0x28a   :  { %651 = vst [vmem:[#allocation2 + $0x8] sm:$0xff] %v642_v5 }
 0x28b   :  { %v646_v7 = vpop.f32.mrf.mxu1 }
 0x28c   :  { %v647_v1 = vadd.f32 %v677_v63, %v646_v7 }
 0x28d   :  { %v944_v8 = vpop.f32.mrf.mxu1 }
 0x28e   :  { %652 = vst [vmem:[#allocation2 + $0x10] sm:$0xff] %v647_v1 }
 0x28f   :  { %961 = shalt.err (!%p958_p4)
}
 0x290   :  { %s975_s9 = smov 128   ;;  %s976_s3 = smov 8  }
 0x291   :  { %664 = dma.vmem_to_hbm [thread:$0]  %s659_s27, 384, %s1371_s10, [#allocation3], %s975_s9, %s975_s9, %s976_s3  }
 0x292   :  { %970 = dma.done.wait [#allocation3], 384  }
 0x293   :  { %971 = vsyncadd [#allocation3], 4294966912 }
 0x294   :  { %668 = vsyncpa [#allocation3], 1 }

</bundles_post_ra>
